<compile_context>
chip_gen: v6e
topology: v6e:2x2x1
jax: 0.10.0
libtpu: 0.0.40
codegen_flags: <defaults>
</compile_context>

<pallas_src>
import jax
import jax.numpy as jnp
from jax.experimental import pallas as pl
from jax.experimental.pallas import tpu as pltpu

_LANE = 128
# ~2 MiB per block: with double-buffered in + out specs the VMEM footprint is
# ~4 x block_bytes ~= 8 MiB -> safe on every generation without raising limits.
_TARGET_BLOCK_BYTES = 2 * 1024 * 1024


def _copy_kernel(x_ref, o_ref):
    # Pure streaming copy of one lane-dense tile.
    o_ref[...] = x_ref[...]


def _materializing_copy(flat):
    """Stream a flat 1-D array HBM -> VMEM -> HBM via a tiled Pallas copy."""
    n = flat.size
    dtype = flat.dtype

    # Lane-dense view: widest last dim (multiple of 128) that divides n.
    width = None
    for w in (4096, 2048, 1024, 512, 256, 128):
        if n % w == 0:
            width = w
            break
    if width is None:
        # Ragged (< one 128-lane row) tail: tiny pad, stripped below. Rare path.
        pad = (-n) % _LANE
        flat = jnp.pad(flat, (0, pad))
        width = _LANE
    rows = flat.size // width

    itemsize = jnp.dtype(dtype).itemsize
    max_rows = max(1, _TARGET_BLOCK_BYTES // (width * itemsize))
    if rows <= max_rows:
        block_rows = rows  # whole row extent in a single block (== full dim)
    else:
        # Multiple of 32 sublanes satisfies f32 / bf16 / int8 packing alike.
        block_rows = max(32, (max_rows // 32) * 32)

    x2d = flat.reshape(rows, width)
    out2d = pl.pallas_call(
        _copy_kernel,
        out_shape=jax.ShapeDtypeStruct((rows, width), dtype),
        grid=(pl.cdiv(rows, block_rows),),
        in_specs=[pl.BlockSpec((block_rows, width), lambda i: (i, 0))],
        out_specs=pl.BlockSpec((block_rows, width), lambda i: (i, 0)),
        input_output_aliases={0: 0},  # donate the flat input buffer
        compiler_params=pltpu.CompilerParams(
            dimension_semantics=("parallel",)
        ),
    )(x2d)

    out_flat = out2d.reshape(-1)
    if out_flat.size != n:
        out_flat = out_flat[:n]
    return out_flat


def pallas_reshape(x, shape, include_batch_dim=0, force_copy=False):
    """Equivalent of Reshape(*shape, include_batch_dim=...).forward(x).

    force_copy=False (default): metadata-only reshape (zero HBM traffic).
    force_copy=True: materialize the result through the Pallas copy kernel.
    """
    out_shape = tuple(shape) if include_batch_dim else (x.shape[0],) + tuple(shape)

    n = x.size
    tgt = 1
    for s in out_shape:
        tgt *= s
    if tgt != n:
        raise ValueError(
            f"cannot reshape array of size {n} into shape {out_shape}"
        )

    if not force_copy:
        # torch-style reshape of a contiguous array is metadata-only.
        return x.reshape(out_shape)

    return _materializing_copy(x.reshape(-1)).reshape(out_shape)


if __name__ == "__main__":
    key = jax.random.PRNGKey(0)
    B, C, H, W = 2, 4, 16, 16
    x = jax.random.normal(key, (B, C, H, W), dtype=jnp.float32)

    # 1) Default metadata-only path: Reshape(C*H*W) -> (B, C*H*W)
    y = pallas_reshape(x, (C * H * W,), include_batch_dim=0)
    y = jax.block_until_ready(y)
    ref = x.reshape(B, C * H * W)
    assert y.shape == ref.shape and y.dtype == ref.dtype
    assert bool(jnp.all(y == ref))

    # 2) Same reshape, forcing the Pallas streaming-copy kernel.
    y_copy = pallas_reshape(x, (C * H * W,), include_batch_dim=0, force_copy=True)
    y_copy = jax.block_until_ready(y_copy)
    assert y_copy.shape == ref.shape and y_copy.dtype == ref.dtype
    assert bool(jnp.all(y_copy == ref))

    # 3) include_batch_dim=1: the given shape contains the batch dim and must
    #    preserve the element count (2*4*16*16 = 2048 elements here).
    y2 = pallas_reshape(x, (B, C * H, W), include_batch_dim=1, force_copy=True)
    y2 = jax.block_until_ready(y2)
    ref2 = x.reshape(B, C * H, W)
    assert y2.shape == ref2.shape
    assert bool(jnp.all(y2 == ref2))

    # 4) Larger input so the copy kernel actually tiles (grid > 1, parallel axis).
    x_big = jax.random.normal(key, (4, 8, 256, 256), dtype=jnp.float32)
    y3 = pallas_reshape(x_big, (8 * 256 * 256,), include_batch_dim=0, force_copy=True)
    y3 = jax.block_until_ready(y3)
    ref3 = x_big.reshape(4, 8 * 256 * 256)
    assert y3.shape == ref3.shape
    assert bool(jnp.all(y3 == ref3))

    print("KERNEL_OK")
</pallas_src>

<mosaic_0001>
module attributes {stable_mosaic.version = 11 : i64} {
  func.func @_copy_kernel(%arg0: i32, %arg1: memref<1x2048xf32, #tpu.memory_space<vmem>>, %arg2: memref<1x2048xf32, #tpu.memory_space<vmem>>) attributes {dimension_semantics = [#tpu.dimension_semantics<parallel>], iteration_bounds = array<i64: 1>, scalar_prefetch = 0 : i64, scratch_operands = 0 : i64, tpu.core_type = #tpu.core_type<tc>, window_params = [{transform_indices = @transform_0, window_bounds = array<i64: 1, 2048>}, {transform_indices = @transform_1, window_bounds = array<i64: 1, 2048>}]} {
    %c0 = arith.constant 0 : index
    %c0_0 = arith.constant 0 : index
    %0 = vector.load %arg1[%c0, %c0_0] : memref<1x2048xf32, #tpu.memory_space<vmem>>, vector<1x2048xf32>
    %c0_1 = arith.constant 0 : index
    %c0_2 = arith.constant 0 : index
    %1 = vector.load %arg2[%c0_1, %c0_2] : memref<1x2048xf32, #tpu.memory_space<vmem>>, vector<1x2048xf32>
    tpu.vector_store %arg2[%c0_1, %c0_2], %0 {strides = array<i32>} : memref<1x2048xf32, #tpu.memory_space<vmem>>, vector<1x2048xf32>,
    return
  }
  func.func @transform_0(%arg0: i32) -> (i32, i32) {
    %c0_i32 = arith.constant 0 : i32
    %c0_i32_0 = arith.constant 0 : i32
    return %arg0, %c0_i32 : i32, i32
  }
  func.func @transform_1(%arg0: i32) -> (i32, i32) {
    %c0_i32 = arith.constant 0 : i32
    %c0_i32_0 = arith.constant 0 : i32
    return %arg0, %c0_i32 : i32, i32
  }
}

</mosaic_0001>

<bundles_post_ra>
// kernel: tpu_custom_call.1
= control target key start
LH: loop header
LB: loop body
LE: loop exit
PB: predicated region body
PF: predicated region fallthrough
CT: control target
= control target key end

     0   :  { %6 = vsyncpa [#allocation3], 0  ;;  %s104_s0 = inlined_call_operand.hbm [shape: f32[1,2048], index: 0, kind: input, shape index: {}, may-alias: {0,1}]   ;;  %s105_s1 = inlined_call_operand.hbm [shape: f32[1,2048], index: 1, kind: output, shape index: {}, may-alias: {0,1}]  }
   0x1   :  { %7 = vsyncpa [#allocation4], 0  ;;  %s86_s6 = smov [#allocation2]  }
   0x2   :  { %s14_s7 = sshll.u32 %s86_s6, 4  ;;  %s15_s7 = int_to_ptr.vmem [resolvable:$true] %s14_s7 }
   0x3   :  { %s50_s8 = scalar_lea.vmem %s15_s7, 256  ;;  %p55_p1 = scmp.lt.s32.totalorder %s15_s7, %s15_s7 }
   0x4   :  { %p51_p0 = scmp.ne.s32.totalorder %s15_s7, %s50_s8  ;;  %p56_p2 = scmp.lt.s32.totalorder %s50_s8, %s50_s8 }
   0x6   :  { %p57_p3 = por %p56_p2, %p55_p1 }
   0x8   :  { %p58_p4 = pnand %p57_p3, %p51_p0 }
   0xa   :  { %61 = shalt.err (!%p58_p4)
}
   0xb   :  { %17 = dma.hbm_to_vmem [thread:$0]  %s104_s0, 256, %s15_s7, [#allocation3]  }
   0xc   :  { %82 = dma.done.wait [#allocation3], 256  }
   0xd   :  { %83 = vsyncadd [#allocation3], 4294967040  ;;  %s87_s11 = smov [#allocation5]   ;;  %v21_v0 = vld [vmem:[#allocation2] sm:$0xff]  ;;  %v22_v1 = vld [vmem:[#allocation2 + $0x8] sm:$0xff] }
   0xe   :  { %s31_s12 = sshll.u32 %s87_s11, 4  ;;  %23 = vst [vmem:[#allocation5] sm:$0xff] %v21_v0  ;;  %24 = vst [vmem:[#allocation5 + $0x8] sm:$0xff] %v22_v1  ;;  %s32_s12 = int_to_ptr.vmem [resolvable:$true] %s31_s12 }
   0xf   :  { %s62_s13 = scalar_lea.vmem %s32_s12, 256  ;;  %p67_p6 = scmp.lt.s32.totalorder %s32_s12, %s32_s12 }
  0x10   :  { %p63_p5 = scmp.ne.s32.totalorder %s32_s12, %s62_s13  ;;  %p68_p7 = scmp.lt.s32.totalorder %s62_s13, %s62_s13 }
  0x12   :  { %p69_p8 = por %p68_p7, %p67_p6 }
  0x14   :  { %p70_p9 = pnand %p69_p8, %p63_p5 }
  0x16   :  { %73 = shalt.err (!%p70_p9)
}
  0x17   :  { %34 = dma.vmem_to_hbm [thread:$0]  %s32_s12, 256, %s105_s1, [#allocation4]  }
  0x18   :  { %84 = dma.done.wait [#allocation4], 256  }
  0x19   :  { %85 = vsyncadd [#allocation4], 4294967040 }
  0x1a   :  { %38 = vsyncpa [#allocation3], 1 }
  0x1b   :  { %39 = vsyncpa [#allocation4], 1 }

</bundles_post_ra>
